<compile_context>
chip_gen: v6e
topology: v6e:2x2x1
jax: 0.10.0
libtpu: 0.0.40
codegen_flags: <defaults>
</compile_context>

<pallas_src>
import functools

import jax
import jax.numpy as jnp
from jax.experimental import pallas as pl
from jax.experimental.pallas import tpu as pltpu


def _round_up(n, m):
    return ((n + m - 1) // m) * m


def augru_kernel(z_ref, h_ref, attn_ref, w_ref, b_ref, out_ref, *, hpad):
    # Single fused MXU matmul: (TB, K) bf16 @ (K, 4*Hp) bf16 -> (TB, 4*Hp) f32.
    gates = jnp.dot(z_ref[...], w_ref[...], preferred_element_type=jnp.float32)
    gates = gates + b_ref[...]

    # Lane-aligned per-gate slabs (hpad is a multiple of 128).
    u_pre = gates[:, 0 * hpad:1 * hpad]           # i_u + h_u
    r_pre = gates[:, 1 * hpad:2 * hpad]           # i_r + h_r
    i_n = gates[:, 2 * hpad:3 * hpad]             # x-only "new" contribution
    h_n = gates[:, 3 * hpad:4 * hpad]             # h-only "new" contribution

    attn = attn_ref[...]                          # (TB, 1) f32, broadcasts over lanes
    update_gate = jax.nn.sigmoid(u_pre) * attn    # attentional update gate
    reset_gate = jax.nn.sigmoid(r_pre)
    new_gate = jnp.tanh(i_n + reset_gate * h_n)

    h = h_ref[...]                                # exact f32 hidden state
    out_ref[...] = (h + update_gate * (new_gate - h)).astype(out_ref.dtype)


def _build_fused_params(wx, bx, wh, bh, input_pad, hidden, hidden_pad):
    """Fused (K, 4*Hp) weight and (1, 4*Hp) bias in f32 (PyTorch [u; r; n] row order)."""
    H, Hp, Ip = hidden, hidden_pad, input_pad
    I = wx.shape[1]
    wx_u, wx_r, wx_n = wx[:H], wx[H:2 * H], wx[2 * H:]
    wh_u, wh_r, wh_n = wh[:H], wh[H:2 * H], wh[2 * H:]
    bx_u, bx_r, bx_n = bx[:H], bx[H:2 * H], bx[2 * H:]
    bh_u, bh_r, bh_n = bh[:H], bh[H:2 * H], bh[2 * H:]

    K = Ip + Hp
    W = jnp.zeros((K, 4 * Hp), jnp.float32)
    # x rows occupy [0:I], h rows occupy [Ip:Ip+H]; everything else stays zero.
    W = W.at[:I, 0 * Hp:0 * Hp + H].set(wx_u.T)
    W = W.at[Ip:Ip + H, 0 * Hp:0 * Hp + H].set(wh_u.T)
    W = W.at[:I, 1 * Hp:1 * Hp + H].set(wx_r.T)
    W = W.at[Ip:Ip + H, 1 * Hp:1 * Hp + H].set(wh_r.T)
    W = W.at[:I, 2 * Hp:2 * Hp + H].set(wx_n.T)          # i_n: x only
    W = W.at[Ip:Ip + H, 3 * Hp:3 * Hp + H].set(wh_n.T)   # h_n: h only

    b = jnp.zeros((1, 4 * Hp), jnp.float32)
    b = b.at[0, 0 * Hp:0 * Hp + H].set(bx_u + bh_u)
    b = b.at[0, 1 * Hp:1 * Hp + H].set(bx_r + bh_r)
    b = b.at[0, 2 * Hp:2 * Hp + H].set(bx_n)
    b = b.at[0, 3 * Hp:3 * Hp + H].set(bh_n)
    return W, b


@functools.partial(jax.jit, static_argnames=("batch_tile",))
def augru_cell(x, hx, attn, wx, bx, wh, bh, *, batch_tile=256):
    """AUGRUCell forward.

    x: (B, I) f32;  hx: (B, H) f32;  attn: (B,) f32
    wx: (3H, I), bx: (3H,), wh: (3H, H), bh: (3H,)   (PyTorch nn.Linear layouts)
    returns hy: (B, H) f32
    """
    B, I = x.shape
    _, H = hx.shape

    Hp = _round_up(H, 128)                      # lane-aligned hidden
    Ip = _round_up(I, 8)                        # sublane-tidy x features
    K = Ip + Hp
    TB = batch_tile if B >= batch_tile else _round_up(B, 8)
    Bp = _round_up(B, TB)

    # Zero-pad activations; concat [x | hx] along features for the fused matmul.
    x_p = jnp.zeros((Bp, Ip), jnp.float32).at[:B, :I].set(x)
    hx_p = jnp.zeros((Bp, Hp), jnp.float32).at[:B, :H].set(hx)
    attn_p = jnp.zeros((Bp, 1), jnp.float32).at[:B, 0].set(attn)
    z = jnp.concatenate([x_p, hx_p], axis=1).astype(jnp.bfloat16)       # (Bp, K)

    W, bias = _build_fused_params(wx, bx, wh, bh, Ip, H, Hp)
    W = W.astype(jnp.bfloat16)

    out = pl.pallas_call(
        functools.partial(augru_kernel, hpad=Hp),
        out_shape=jax.ShapeDtypeStruct((Bp, Hp), jnp.float32),
        grid_spec=pltpu.PrefetchScalarGridSpec(
            num_scalar_prefetch=0,
            grid=(Bp // TB,),
            in_specs=[
                pl.BlockSpec((TB, K), lambda i: (i, 0)),       # z (bf16), pipelined
                pl.BlockSpec((TB, Hp), lambda i: (i, 0)),      # hx (f32), pipelined
                pl.BlockSpec((TB, 1), lambda i: (i, 0)),       # attn (f32)
                pl.BlockSpec((K, 4 * Hp), lambda i: (0, 0)),   # fused weight, VMEM-resident
                pl.BlockSpec((1, 4 * Hp), lambda i: (0, 0)),   # fused bias, VMEM-resident
            ],
            out_specs=pl.BlockSpec((TB, Hp), lambda i: (i, 0)),
        ),
        compiler_params=pltpu.CompilerParams(
            dimension_semantics=("parallel",),
            vmem_limit_bytes=64 * 1024 * 1024,
        ),
    )(z, hx_p, attn_p, W, bias)

    return out[:B, :H]


def augru_ref(x, hx, attn, wx, bx, wh, bh):
    """Pure-JAX f32 reference mirroring the PyTorch forward."""
    gate_x = x @ wx.T + bx
    gate_h = hx @ wh.T + bh
    H = hx.shape[1]
    i_u, i_r, i_n = gate_x[:, :H], gate_x[:, H:2 * H], gate_x[:, 2 * H:]
    h_u, h_r, h_n = gate_h[:, :H], gate_h[:, H:2 * H], gate_h[:, 2 * H:]
    update_gate = jax.nn.sigmoid(i_u + h_u) * attn[:, None]
    reset_gate = jax.nn.sigmoid(i_r + h_r)
    new_gate = jnp.tanh(i_n + reset_gate * h_n)
    return hx + update_gate * (new_gate - hx)


if __name__ == "__main__":
    B, INPUT_SIZE, HIDDEN_SIZE = 8, 16, 32

    key = jax.random.PRNGKey(0)
    kx, kh, ka, kwx, kbx, kwh, kbh = jax.random.split(key, 7)

    x = jax.random.normal(kx, (B, INPUT_SIZE), dtype=jnp.float32)
    hx = jax.random.normal(kh, (B, HIDDEN_SIZE), dtype=jnp.float32)
    attn = jax.random.uniform(ka, (B,), dtype=jnp.float32)

    # nn.Linear-shaped params: x2h (3H, I) + (3H,), h2h (3H, H) + (3H,)
    bound_x = 1.0 / jnp.sqrt(jnp.float32(INPUT_SIZE))
    bound_h = 1.0 / jnp.sqrt(jnp.float32(HIDDEN_SIZE))
    wx = jax.random.uniform(kwx, (3 * HIDDEN_SIZE, INPUT_SIZE),
                            minval=-bound_x, maxval=bound_x, dtype=jnp.float32)
    bx = jax.random.uniform(kbx, (3 * HIDDEN_SIZE,),
                            minval=-bound_x, maxval=bound_x, dtype=jnp.float32)
    wh = jax.random.uniform(kwh, (3 * HIDDEN_SIZE, HIDDEN_SIZE),
                            minval=-bound_h, maxval=bound_h, dtype=jnp.float32)
    bh = jax.random.uniform(kbh, (3 * HIDDEN_SIZE,),
                            minval=-bound_h, maxval=bound_h, dtype=jnp.float32)

    hy = augru_cell(x, hx, attn, wx, bx, wh, bh)
    hy = jax.block_until_ready(hy)

    hy_ref = augru_ref(x, hx, attn, wx, bx, wh, bh)
    assert hy.shape == (B, HIDDEN_SIZE)
    # bf16 MXU inputs (f32 accumulation) -> loosened tolerance vs the pure-f32 reference.
    assert jnp.allclose(hy, hy_ref, atol=2e-2, rtol=2e-2), "mismatch vs reference"

    print("KERNEL_OK")
</pallas_src>

<mosaic_0001>
module attributes {stable_mosaic.version = 11 : i64} {
  func.func @augru_kernel(%arg0: i32, %arg1: memref<8x144xbf16, #tpu.memory_space<vmem>>, %arg2: memref<8x128xf32, #tpu.memory_space<vmem>>, %arg3: memref<8x1xf32, #tpu.memory_space<vmem>>, %arg4: memref<144x512xbf16, #tpu.memory_space<vmem>>, %arg5: memref<1x512xf32, #tpu.memory_space<vmem>>, %arg6: memref<8x128xf32, #tpu.memory_space<vmem>>) attributes {dimension_semantics = [#tpu.dimension_semantics<parallel>], iteration_bounds = array<i64: 1>, scalar_prefetch = 0 : i64, scratch_operands = 0 : i64, tpu.core_type = #tpu.core_type<tc>, window_params = [{transform_indices = @transform_0, window_bounds = array<i64: 8, 144>}, {transform_indices = @transform_1, window_bounds = array<i64: 8, 128>}, {transform_indices = @transform_2, window_bounds = array<i64: 8, 1>}, {pipeline_mode = #tpu.pipeline_mode<synchronous>, transform_indices = @transform_3, window_bounds = array<i64: 144, 512>}, {pipeline_mode = #tpu.pipeline_mode<synchronous>, transform_indices = @transform_4, window_bounds = array<i64: 1, 512>}, {transform_indices = @transform_5, window_bounds = array<i64: 8, 128>}]} {
    %c0 = arith.constant 0 : index
    %c0_0 = arith.constant 0 : index
    %0 = vector.load %arg1[%c0, %c0_0] : memref<8x144xbf16, #tpu.memory_space<vmem>>, vector<8x144xbf16>
    %c0_1 = arith.constant 0 : index
    %c0_2 = arith.constant 0 : index
    %1 = vector.load %arg4[%c0_1, %c0_2] : memref<144x512xbf16, #tpu.memory_space<vmem>>, vector<144x512xbf16>
    %cst = arith.constant dense<0.000000e+00> : vector<8x512xf32>
    %2 = tpu.matmul %0, %1, %cst {dimension_numbers = #tpu.dot_dimension_numbers<[1], [0], [0], [1], [0, 0, 1, 1], [], []>} : vector<8x144xbf16>, vector<144x512xbf16>, vector<8x512xf32> -> vector<8x512xf32>
    %c0_3 = arith.constant 0 : index
    %c0_4 = arith.constant 0 : index
    %3 = vector.load %arg5[%c0_3, %c0_4] : memref<1x512xf32, #tpu.memory_space<vmem>>, vector<1x512xf32>
    %4 = vector.broadcast %3 : vector<1x512xf32> to vector<8x512xf32>
    %5 = arith.addf %2, %4 : vector<8x512xf32>
    %6 = vector.extract_strided_slice %5 {offsets = [0, 0], sizes = [8, 128], strides = [1, 1]} : vector<8x512xf32> to vector<8x128xf32>
    %7 = vector.extract_strided_slice %5 {offsets = [0, 128], sizes = [8, 128], strides = [1, 1]} : vector<8x512xf32> to vector<8x128xf32>
    %8 = vector.extract_strided_slice %5 {offsets = [0, 256], sizes = [8, 128], strides = [1, 1]} : vector<8x512xf32> to vector<8x128xf32>
    %9 = vector.extract_strided_slice %5 {offsets = [0, 384], sizes = [8, 128], strides = [1, 1]} : vector<8x512xf32> to vector<8x128xf32>
    %c0_5 = arith.constant 0 : index
    %c0_6 = arith.constant 0 : index
    %10 = vector.load %arg3[%c0_5, %c0_6] : memref<8x1xf32, #tpu.memory_space<vmem>>, vector<8x1xf32>
    %11 = arith.negf %6 : vector<8x128xf32>
    %12 = math.exp %11 : vector<8x128xf32>
    %cst_7 = arith.constant 1.000000e+00 : f32
    %13 = vector.broadcast %cst_7 : f32 to vector<8x128xf32>
    %14 = arith.addf %13, %12 : vector<8x128xf32>
    %15 = arith.divf %13, %14 : vector<8x128xf32>
    %16 = vector.broadcast %10 : vector<8x1xf32> to vector<8x128xf32>
    %17 = arith.mulf %15, %16 : vector<8x128xf32>
    %18 = arith.negf %7 : vector<8x128xf32>
    %19 = math.exp %18 : vector<8x128xf32>
    %cst_8 = arith.constant 1.000000e+00 : f32
    %20 = vector.broadcast %cst_8 : f32 to vector<8x128xf32>
    %21 = arith.addf %20, %19 : vector<8x128xf32>
    %22 = arith.divf %20, %21 : vector<8x128xf32>
    %23 = arith.mulf %22, %9 : vector<8x128xf32>
    %24 = arith.addf %8, %23 : vector<8x128xf32>
    %25 = math.tanh %24 : vector<8x128xf32>
    %c0_9 = arith.constant 0 : index
    %c0_10 = arith.constant 0 : index
    %26 = vector.load %arg2[%c0_9, %c0_10] : memref<8x128xf32, #tpu.memory_space<vmem>>, vector<8x128xf32>
    %27 = arith.subf %25, %26 : vector<8x128xf32>
    %28 = arith.mulf %17, %27 : vector<8x128xf32>
    %29 = arith.addf %26, %28 : vector<8x128xf32>
    %c0_11 = arith.constant 0 : index
    %c0_12 = arith.constant 0 : index
    %30 = vector.load %arg6[%c0_11, %c0_12] : memref<8x128xf32, #tpu.memory_space<vmem>>, vector<8x128xf32>
    tpu.vector_store %arg6[%c0_11, %c0_12], %29 {strides = array<i32>} : memref<8x128xf32, #tpu.memory_space<vmem>>, vector<8x128xf32>,
    return
  }
  func.func @transform_0(%arg0: i32) -> (i32, i32) {
    %c0_i32 = arith.constant 0 : i32
    %c0_i32_0 = arith.constant 0 : i32
    return %arg0, %c0_i32 : i32, i32
  }
  func.func @transform_1(%arg0: i32) -> (i32, i32) {
    %c0_i32 = arith.constant 0 : i32
    %c0_i32_0 = arith.constant 0 : i32
    return %arg0, %c0_i32 : i32, i32
  }
  func.func @transform_2(%arg0: i32) -> (i32, i32) {
    %c0_i32 = arith.constant 0 : i32
    %c0_i32_0 = arith.constant 0 : i32
    return %arg0, %c0_i32 : i32, i32
  }
  func.func @transform_3(%arg0: i32) -> (i32, i32) {
    %c0_i32 = arith.constant 0 : i32
    %c0_i32_0 = arith.constant 0 : i32
    %c0_i32_1 = arith.constant 0 : i32
    return %c0_i32, %c0_i32_0 : i32, i32
  }
  func.func @transform_4(%arg0: i32) -> (i32, i32) {
    %c0_i32 = arith.constant 0 : i32
    %c0_i32_0 = arith.constant 0 : i32
    %c0_i32_1 = arith.constant 0 : i32
    return %c0_i32, %c0_i32_0 : i32, i32
  }
  func.func @transform_5(%arg0: i32) -> (i32, i32) {
    %c0_i32 = arith.constant 0 : i32
    %c0_i32_0 = arith.constant 0 : i32
    return %arg0, %c0_i32 : i32, i32
  }
}

</mosaic_0001>

<bundles_post_ra>
// kernel: augru_cell.1
= control target key start
LH: loop header
LB: loop body
LE: loop exit
PB: predicated region body
PF: predicated region fallthrough
CT: control target
= control target key end

     0   :  { %v527_v2 = vmov 0   ;;  %vm267_vm0 = vcmask 130048   ;;  %s682_s0 = inlined_call_operand.vmem [shape: bf16[8,144], index: 0, kind: input, shape index: {}]   ;;  %s683_s1 = inlined_call_operand.vmem [shape: f32[8,128], index: 1, kind: input, shape index: {}]   ;;  %s684_s2 = inlined_call_operand.vmem [shape: f32[8,1], index: 2, kind: input, shape index: {}]   ;;  %s685_s3 = inlined_call_operand.vmem [shape: bf16[144,512], index: 3, kind: input, shape index: {}]   ;;  %s686_s4 = inlined_call_operand.vmem [shape: f32[1,512], index: 4, kind: input, shape index: {}]   ;;  %s687_s5 = inlined_call_operand.hbm [shape: f32[8,128], index: 5, kind: output, shape index: {}]  }
   0x1   :  { %v439_v0 = vld [vmem:[%s685_s3 + $0xe4] ss:$16 sps:$4 sm:$0xff]   ;;  %v441_v1 = vld [vmem:[%s685_s3 + $0xe0] ss:$16 sps:$4 sm:$0xff]   ;;  %438 = vset.pattern.permute.xlu0 %v527_v2  ;;  %v460_v8 = vld [vmem:[%s685_s3 + $0xec] ss:$16 sps:$4 sm:$0xff]  }
   0x2   :  { %271 = vmatprep.subr.bf16.mxu0 %v439_v0  ;;  %v442_v3 = vld [vmem:[%s685_s3 + $0xc4] ss:$16 sps:$4 sm:$0xff]   ;;  %v444_v4 = vld [vmem:[%s685_s3 + $0xc0] ss:$16 sps:$4 sm:$0xff]   ;;  %v462_v9 = vld [vmem:[%s685_s3 + $0xe8] ss:$16 sps:$4 sm:$0xff]   ;;  %312 = vmatprep.subr.bf16.mxu1 %v460_v8 }
   0x3   :  { %272 = vmatpush1.bf16.msra.mxu0 %v441_v1  ;;  %v445_v5 = vld [vmem:[%s685_s3 + $0xa4] ss:$16 sps:$4 sm:$0xff]   ;;  %v447_v6 = vld [vmem:[%s685_s3 + $0xa0] ss:$16 sps:$4 sm:$0xff]   ;;  %v466_v12 = vld [vmem:[%s685_s3 + $0xcc] ss:$16 sps:$4 sm:$0xff]   ;;  %313 = vmatpush1.bf16.msra.mxu1 %v462_v9 }
   0x4   :  { %273 = vmatprep.subr.bf16.mxu0 %v442_v3  ;;  %v448_v7 = vld [vmem:[%s685_s3 + $0x84] ss:$16 sps:$4 sm:$0xff]   ;;  %v450_v10 = vld [vmem:[%s685_s3 + $0x80] ss:$16 sps:$4 sm:$0xff]   ;;  %v468_v13 = vld [vmem:[%s685_s3 + $0xc8] ss:$16 sps:$4 sm:$0xff]   ;;  %314 = vmatprep.subr.bf16.mxu1 %v466_v12 }
   0x5   :  { %v451_v11 = vld [vmem:[%s685_s3 + $0x64] ss:$16 sps:$4 sm:$0xff]   ;;  %v453_v14 = vld [vmem:[%s685_s3 + $0x60] ss:$16 sps:$4 sm:$0xff]   ;;  %v472_v15 = vld [vmem:[%s685_s3 + $0xac] ss:$16 sps:$4 sm:$0xff]  }
   0x6   :  { %v22_v16 = vld [vmem:[%s682_s0] sm:$0xff]  ;;  %v476_v19 = vld [vmem:[%s685_s3 + $0xa8] ss:$16 sps:$4 sm:$0xff]   ;;  %v477_v20 = vld [vmem:[%s685_s3 + $0x8c] ss:$16 sps:$4 sm:$0xff]  }
   0x7   :  { %274 = vmatpush1.bf16.msra.mxu0 %v444_v4  ;;  %v454_v17 = vld [vmem:[%s685_s3 + $0x44] ss:$16 sps:$4 sm:$0xff]   ;;  %v395_v18 = vcombine.high %v22_v16, %v22_v16  ;;  %315 = vmatpush1.bf16.msra.mxu1 %v468_v13  ;;  %v456_v21 = vld [vmem:[%s685_s3 + $0x40] ss:$16 sps:$4 sm:$0xff]   ;;  %v479_v23 = vld [vmem:[%s685_s3 + $0x88] ss:$16 sps:$4 sm:$0xff]  }
   0x8   :  { %275 = vmatprep.subr.bf16.mxu0 %v445_v5  ;;  %316 = vmatprep.subr.bf16.mxu1 %v472_v15  ;;  %v457_v22 = vld [vmem:[%s685_s3 + $0x24] ss:$16 sps:$4 sm:$0xff]   ;;  %v480_v24 = vld [vmem:[%s685_s3 + $0x6c] ss:$16 sps:$4 sm:$0xff]   ;;  %v459_v25 = vld [vmem:[%s685_s3 + $0x20] ss:$16 sps:$4 sm:$0xff]  }
   0x9   :  { %432 = vmatprep.mubr.msk.bf16.mxu0 %vm267_vm0, %v395_v18  ;;  %433 = vmatprep.mubr.msk.bf16.mxu1 %vm267_vm0, %v395_v18  ;;  %v463_v26 = vld [vmem:[%s685_s3 + $0x4] ss:$16 sps:$4 sm:$0xff]   ;;  %v482_v28 = vld [vmem:[%s685_s3 + $0x68] ss:$16 sps:$4 sm:$0xff]  }
   0xa   :  { %v353_v27 = vld [vmem:[%s684_s2] sm:$0xff] }
   0xb   :  { %276 = vmatpush1.bf16.msra.mxu0 %v447_v6  ;;  %317 = vmatpush1.bf16.msra.mxu1 %v476_v19 }
   0xc   :  { %277 = vmatprep.subr.bf16.mxu0 %v448_v7  ;;  %318 = vmatprep.subr.bf16.mxu1 %v477_v20 }
   0xd   :  { %362 = vperm.xlu0 %438, %v353_v27  }
   0xf   :  { %278 = vmatpush1.bf16.msra.mxu0 %v450_v10  ;;  %319 = vmatpush1.bf16.msra.mxu1 %v479_v23 }
  0x10   :  { %279 = vmatprep.subr.bf16.mxu0 %v451_v11 }
  0x13   :  { %280 = vmatpush1.bf16.msra.mxu0 %v453_v14 }
  0x14   :  { %281 = vmatprep.subr.bf16.mxu0 %v454_v17 }
  0x17   :  { %282 = vmatpush1.bf16.msra.mxu0 %v456_v21 }
  0x18   :  { %283 = vmatprep.subr.bf16.mxu0 %v457_v22 }
  0x19   :  { %10 = vsyncpa [#allocation3], 0  ;;  %320 = vmatprep.subr.bf16.mxu1 %v480_v24  ;;  %v483_v29 = vld [vmem:[%s685_s3 + $0x4c] ss:$16 sps:$4 sm:$0xff]   ;;  %v465_v30 = vld [vmem:[%s685_s3] ss:$16 sps:$4 sm:$0xff]   ;;  %v394_v36 = vcombine.low %v22_v16, %v22_v16  ;;  %v61_v41 = vlaneseq }
  0x1a   :  { %v469_v31 = vld [vmem:[%s685_s3 + $0x104] ss:$16 sps:$4 sm:$0xff]   ;;  %321 = vmatpush1.bf16.msra.mxu1 %v482_v28  ;;  %v485_v32 = vld [vmem:[%s685_s3 + $0x48] ss:$16 sps:$4 sm:$0xff]   ;;  %v486_v33 = vld [vmem:[%s685_s3 + $0x2c] ss:$16 sps:$4 sm:$0xff]  }
  0x1b   :  { %284 = vmatpush1.bf16.msra.mxu0 %v459_v25  ;;  %322 = vmatprep.subr.bf16.mxu1 %v483_v29  ;;  %v471_v34 = vld [vmem:[%s685_s3 + $0x100] ss:$16 sps:$4 sm:$0xff]   ;;  %v488_v35 = vld [vmem:[%s685_s3 + $0x28] ss:$16 sps:$4 sm:$0xff]   ;;  %v489_v37 = vld [vmem:[%s685_s3 + $0xc] ss:$16 sps:$4 sm:$0xff]  }
  0x1c   :  { %285 = vmatprep.subr.bf16.mxu0 %v463_v26  ;;  %v491_v38 = vld [vmem:[%s685_s3 + $0x8] ss:$16 sps:$4 sm:$0xff]   ;;  %v492_v39 = vld [vmem:[%s685_s3 + $0x10c] ss:$16 sps:$4 sm:$0xff]   ;;  %v62_v42 = vshrl.u32 %v61_v41, 7  ;;  %v375_v10 = vld [vmem:[%s683_s1] sm:$0xff] }
  0x1d   :  { %v494_v40 = vld [vmem:[%s685_s3 + $0x108] ss:$16 sps:$4 sm:$0xff]   ;;  %v59_v44 = vld [vmem:[%s686_s4] sm:$0xf]  ;;  %s528_s18 = smov [#allocation2]  }
  0x1e   :  { %323 = vmatpush1.bf16.msra.mxu1 %v485_v32  ;;  %v67_v43 = vsub.s32 1, %v62_v42  ;;  %v63_v48 = vsub.s32 0, %v62_v42  ;;  %v75_v62 = vsub.s32 3, %v62_v42  ;;  %v71_v63 = vsub.s32 2, %v62_v42  ;;  %s386_s19 = sshll.u32 %s528_s18, 4  ;;  %s387_s19 = int_to_ptr.vmem [resolvable:$true] %s386_s19 }
  0x1f   :  { %286 = vmatpush1.bf16.msra.mxu0 %v465_v30  ;;  %324 = vmatprep.subr.bf16.mxu1 %v486_v33  ;;  %s505_s20 = scalar_lea.vmem %s387_s19, 128  ;;  %p510_p1 = scmp.lt.s32.totalorder %s387_s19, %s387_s19 }
  0x20   :  { %301 = vmatprep.subr.bf16.mxu0 %v469_v31  ;;  %v68_v45 = vrot.slane %v59_v44, %v67_v43  ;;  %v64_v53 = vrot.slane %v59_v44, %v63_v48  ;;  %v76_v0 = vrot.slane %v59_v44, %v75_v62  ;;  %v72_v2 = vrot.slane %v59_v44, %v71_v63  ;;  %p506_p0 = scmp.ne.s32.totalorder %s387_s19, %s505_s20  ;;  %p511_p2 = scmp.lt.s32.totalorder %s505_s20, %s505_s20 }
  0x22   :  { %325 = vmatpush1.bf16.msra.mxu1 %v488_v35  ;;  %p512_p3 = por %p511_p2, %p510_p1 }
  0x23   :  { %302 = vmatpush2.bf16.msra.mxu0 %v471_v34  ;;  %326 = vmatprep.subr.bf16.mxu1 %v489_v37 }
  0x24   :  { %p513_p4 = pnand %p512_p3, %p506_p0 }
  0x26   :  { %304 = vmatmul.mubr.bf16.vlgmr.msra.gmra.mxu0 %v394_v36  ;;  %327 = vmatpush1.bf16.msra.mxu1 %v491_v38 }
  0x27   :  { %342 = vmatprep.subr.bf16.mxu1 %v492_v39 }
  0x2a   :  { %343 = vmatpush2.bf16.msra.mxu1 %v494_v40 }
  0x2d   :  { %345 = vmatmul.mubr.bf16.vlgmr.msra.gmra.mxu1 %v394_v36 }
  0x88   :  { %v363_v11 = vpop.permute.xlu0 %362 }
  0xe6   :  { %v305_v46 = vpop.f32.mrf.mxu0 }
  0xe7   :  { %v306_v55 = vadd.f32 %v305_v46, %v64_v53 }
  0xe8   :  { %v307_v47 = vpop.f32.mrf.mxu0 }
  0xe9   :  { %v308_v49 = vadd.f32 %v307_v47, %v68_v45  ;;  %v434_v58 = vmul.f32 -1.442695, %v306_v55 }
  0xea   :  { %v309_v50 = vpop.f32.mrf.mxu0 }
  0xeb   :  { %v435_v51 = vmul.f32 -1.442695, %v308_v49 }
  0xec   :  { %v310_v52 = vpop.f32.mrf.mxu0 }
  0xed   :  { %495 = vpow2.f32 %v435_v51  ;;  %v346_v54 = vpop.f32.mrf.mxu1 }
  0xee   :  { %497 = vpow2.f32 %v434_v58  ;;  %v347_v6 = vadd.f32 %v346_v54, %v72_v2 }
  0xef   :  { %v348_v56 = vpop.f32.mrf.mxu1 }
  0xf0   :  { %v349_v4 = vadd.f32 %v348_v56, %v76_v0 }
  0xf1   :  { %v350_v57 = vpop.f32.mrf.mxu1 }
  0xf3   :  { %v351_v59 = vpop.f32.mrf.mxu1 }
  0xfa   :  { %v496_v60 = vpop.eup %495 }
  0xfb   :  { %v369_v61 = vadd.f32 1.0, %v496_v60  ;;  %v498_v1 = vpop.eup %497 }
  0xfc   :  { %v357_v3 = vadd.f32 1.0, %v498_v1 }
  0xfd   :  { %499 = vrcp.f32 %v369_v61 }
  0xfe   :  { %501 = vrcp.f32 %v357_v3 }
 0x10a   :  { %v500_v5 = vpop.eup %499 }
 0x10b   :  { %v372_v7 = vmul.f32 %v500_v5, %v349_v4  ;;  %v502_v9 = vpop.eup %501 }
 0x10c   :  { %v365_v13 = vmul.f32 %v502_v9, %v363_v11 }
 0x10d   :  { %v373_v8 = vadd.f32 %v372_v7, %v347_v6 }
 0x10f   :  { %503 = vtanh.f32 %v373_v8 }
 0x11c   :  { %v504_v12 = vpop.eup %503 }
 0x11d   :  { %v376_v14 = vsub.f32 %v504_v12, %v375_v10 }
 0x11f   :  { %v377_v15 = vmul.f32 %v376_v14, %v365_v13 }
 0x121   :  { %v378_v16 = vadd.f32 %v377_v15, %v375_v10 }
 0x123   :  { %379 = vst [vmem:[#allocation2] sm:$0xff] %v378_v16 }
 0x124   :  { %516 = shalt.err (!%p513_p4)
}
 0x125   :  { %389 = dma.vmem_to_hbm [thread:$0]  %s387_s19, 128, %s687_s5, [#allocation3]  }
 0x126   :  { %525 = dma.done.wait [#allocation3], 128  }
 0x127   :  { %526 = vsyncadd [#allocation3], 4294967168 }
 0x128   :  { %393 = vsyncpa [#allocation3], 1 }

</bundles_post_ra>
